<compile_context>
chip_gen: v7x
topology: tpu7x:2x2x1
jax: 0.10.0
libtpu: 0.0.40
codegen_flags: <defaults>
</compile_context>

<pallas_src>
import functools

import jax
import jax.numpy as jnp
import numpy as np
from jax.experimental import pallas as pl
from jax.experimental.pallas import tpu as pltpu

KV_TILE = 128   # kv tiles / padded context length are lane-dense multiples of 128


# ----------------------------- small helpers --------------------------------


def _round_up(x, m):
    return ((x + m - 1) // m) * m


def _nbytes(shape, dtype):
    return int(np.prod(shape)) * np.dtype(dtype).itemsize


def _pick_tile(n, max_tile):
    """Largest 8-aligned tile <= max_tile that divides n (else n itself)."""
    for cand in (512, 256, 128, 64, 32, 16, 8):
        if cand <= max_tile and cand <= n and n % cand == 0:
            return cand
    return n


def _pick_inner_tile(inner, max_tile=512):
    """Largest 128-multiple tile <= max_tile that divides the FF inner dim."""
    for cand in (512, 256, 128):
        if cand <= max_tile and cand <= inner and inner % cand == 0:
            return cand
    return inner


_VMEM_CAP = None


def _vmem_cap_bytes():
    global _VMEM_CAP
    if _VMEM_CAP is None:
        try:
            _VMEM_CAP = int(pltpu.get_tpu_info().vmem_capacity_bytes)
        except Exception:
            _VMEM_CAP = 64 << 20          # assume the smallest (v7x) if unknown
    return _VMEM_CAP


def _compiler_params(semantics, est_bytes):
    cap = (_vmem_cap_bytes() * 3) // 4     # headroom for compiler-internal scratch
    limit = int(min(cap, max(16 << 20, int(est_bytes) + (4 << 20))))
    return pltpu.CompilerParams(dimension_semantics=semantics,
                                vmem_limit_bytes=limit)


_BUFFER_ONE_OK = None


def _single_buffer_ok():
    """Feature-probe pipeline_mode=pl.Buffered(1); fall back cleanly if absent."""
    global _BUFFER_ONE_OK
    if _BUFFER_ONE_OK is None:
        try:
            def _probe(x_ref, o_ref):
                o_ref[...] = x_ref[...]

            fn = pl.pallas_call(
                _probe,
                out_shape=jax.ShapeDtypeStruct((8, 128), jnp.float32),
                grid=(2,),
                in_specs=[pl.BlockSpec((8, 128), lambda i: (0, 0),
                                       pipeline_mode=pl.Buffered(1))],
                out_specs=pl.BlockSpec((8, 128), lambda i: (0, 0)))
            jax.block_until_ready(fn(jnp.zeros((8, 128), jnp.float32)))
            _BUFFER_ONE_OK = True
        except Exception:
            _BUFFER_ONE_OK = False
    return _BUFFER_ONE_OK


def _const_spec(block_shape, index_map):
    """BlockSpec for a grid-invariant block; single-buffered when supported."""
    if _single_buffer_ok():
        return pl.BlockSpec(block_shape, index_map, pipeline_mode=pl.Buffered(1))
    return pl.BlockSpec(block_shape, index_map)


def _ln_f32(x, g, b, eps):
    """LayerNorm over the last axis, statistics in f32."""
    mu = jnp.mean(x, axis=-1, keepdims=True)
    xc = x - mu
    var = jnp.mean(xc * xc, axis=-1, keepdims=True)
    return xc * jax.lax.rsqrt(var + eps) * g + b


# ----------------------------- Pallas kernels -------------------------------


def _kv_proj_kernel(ctx_ref, g_ref, b_ref, wk_ref, wv_ref, k_ref, v_ref,
                    *, norm_ctx, eps):
    """K = LN?(ctx_tile) @ Wk, V = LN?(ctx_tile) @ Wv  (wide, lane-dense matmuls)."""
    x = ctx_ref[0].astype(jnp.float32)                                  # (TKV, Dk)
    if norm_ctx:
        x = _ln_f32(x, g_ref[...].astype(jnp.float32),
                    b_ref[...].astype(jnp.float32), eps)
    cdt = wk_ref.dtype
    xc = x.astype(cdt)
    k = jnp.dot(xc, wk_ref[...], preferred_element_type=jnp.float32)    # (TKV, I)
    v = jnp.dot(xc, wv_ref[...], preferred_element_type=jnp.float32)
    k_ref[0] = k.astype(k_ref.dtype)
    v_ref[0] = v.astype(v_ref.dtype)


def _flash_attn_kernel(x_ref, k_ref, v_ref, g_ref, b_ref, wq_ref, wo_ref, bo_ref,
                       o_ref, q_scr, m_scr, l_scr, acc_scr,
                       *, heads, head_dim, kv_valid, mask_kv, eps):
    """Fused: LN(q-tile) -> Q proj (once) -> online-softmax attention over kv
    tiles of precomputed K/V -> out projection -> + residual."""
    kv = pl.program_id(2)
    cdt = wq_ref.dtype
    kv_tile = k_ref.shape[1]

    @pl.when(kv == 0)
    def _init():
        x = x_ref[0].astype(jnp.float32)                                # (TQ, D)
        xn = _ln_f32(x, g_ref[...].astype(jnp.float32),
                     b_ref[...].astype(jnp.float32), eps)
        # wide, lane-dense (TQ, I) query projection; softmax scale pre-folded in wq
        q_scr[...] = jnp.dot(xn.astype(cdt), wq_ref[...],
                             preferred_element_type=jnp.float32).astype(q_scr.dtype)
        m_scr[...] = jnp.full(m_scr.shape, -1e30, dtype=m_scr.dtype)
        l_scr[...] = jnp.zeros(l_scr.shape, dtype=l_scr.dtype)
        acc_scr[...] = jnp.zeros(acc_scr.shape, dtype=acc_scr.dtype)

    k = k_ref[0]                                                        # (TKV, I)
    v = v_ref[0]
    if mask_kv:  # pad columns of the (zero-padded) context are masked out
        col = kv * kv_tile + jax.lax.broadcasted_iota(jnp.int32, (1, kv_tile), 1)
        valid = col < kv_valid

    for h in range(heads):                          # static unroll over heads
        lo = h * head_dim
        hi = lo + head_dim
        q_h = q_scr[:, lo:hi]                       # (TQ, hd) lane slice
        # contract the last dim of BOTH operands: no XLU transpose of K
        s = jax.lax.dot_general(q_h, k[:, lo:hi], (((1,), (1,)), ((), ())),
                                preferred_element_type=jnp.float32)     # (TQ, TKV)
        if mask_kv:
            s = jnp.where(valid, s, -1e30)
        m_prev = m_scr[h]                                               # (TQ, 1)
        m_new = jnp.maximum(m_prev, jnp.max(s, axis=-1, keepdims=True))
        alpha = jnp.exp(m_prev - m_new)
        p = jnp.exp(s - m_new)                                          # f32
        l_scr[h] = alpha * l_scr[h] + jnp.sum(p, axis=-1, keepdims=True)
        pv = jnp.dot(p.astype(cdt), v[:, lo:hi],
                     preferred_element_type=jnp.float32)                # (TQ, hd)
        acc_scr[:, lo:hi] = alpha * acc_scr[:, lo:hi] + pv
        m_scr[h] = m_new

    @pl.when(kv == pl.num_programs(2) - 1)
    def _finalize():
        # deferred per-head softmax normalization on the small (TQ, hd) slices
        for h in range(heads):
            lo = h * head_dim
            hi = lo + head_dim
            inv = pl.reciprocal(l_scr[h], approx=True)
            acc_scr[:, lo:hi] = acc_scr[:, lo:hi] * inv
        out = jnp.dot(acc_scr[...].astype(cdt), wo_ref[...],
                      preferred_element_type=jnp.float32)               # (TQ, D)
        out = out + bo_ref[...].astype(jnp.float32) + x_ref[0].astype(jnp.float32)
        o_ref[0] = out.astype(o_ref.dtype)


def _geglu_ff_kernel(x_ref, g_ref, b_ref, w1v_ref, b1v_ref, w1g_ref, b1g_ref,
                     w2_ref, b2_ref, o_ref, xn_scr, acc_scr, *, eps):
    """Fused: LN(tile) (once) -> GEGLU feed-forward tiled over the inner dim
    (accumulated in f32 scratch) -> + residual."""
    j = pl.program_id(2)
    cdt = w1v_ref.dtype

    @pl.when(j == 0)
    def _init():
        x = x_ref[0].astype(jnp.float32)                                # (TQ, D)
        xn = _ln_f32(x, g_ref[...].astype(jnp.float32),
                     b_ref[...].astype(jnp.float32), eps)
        xn_scr[...] = xn.astype(xn_scr.dtype)
        acc_scr[...] = jnp.zeros(acc_scr.shape, dtype=acc_scr.dtype)

    xn = xn_scr[...]                                                    # (TQ, D)
    val = jnp.dot(xn, w1v_ref[...], preferred_element_type=jnp.float32) \
        + b1v_ref[...].astype(jnp.float32)
    gate = jnp.dot(xn, w1g_ref[...], preferred_element_type=jnp.float32) \
        + b1g_ref[...].astype(jnp.float32)
    # exact (erf) GELU on the gate, matching torch.nn.functional.gelu default
    gate = 0.5 * gate * (1.0 + jax.lax.erf(gate * (1.0 / np.sqrt(2.0))))
    act = (val * gate).astype(cdt)                                      # (TQ, ti)
    acc_scr[...] += jnp.dot(act, w2_ref[...], preferred_element_type=jnp.float32)

    @pl.when(j == pl.num_programs(2) - 1)
    def _finalize():
        out = acc_scr[...] + b2_ref[...].astype(jnp.float32) + x_ref[0].astype(jnp.float32)
        o_ref[0] = out.astype(o_ref.dtype)


# ----------------------------- wrappers -------------------------------------


def project_kv(ctx, norm_g, norm_b, wk, wv, *, norm_ctx, eps=1e-5):
    """K = LN?(ctx) @ Wk, V = LN?(ctx) @ Wv computed ONCE per batch element.
    The context is zero-padded to a multiple of KV_TILE so downstream score
    matrices are lane-dense; pad columns are masked in the attention kernel."""
    B, Sk, Dk = ctx.shape
    I = wk.shape[1]
    skp = _round_up(Sk, KV_TILE)
    if skp != Sk:
        ctx = jnp.pad(ctx, ((0, 0), (0, skp - Sk), (0, 0)))
    if norm_g is None:  # cross-attention: no LayerNorm on the encoder states
        norm_g = jnp.ones((1, Dk), jnp.float32)
        norm_b = jnp.zeros((1, Dk), jnp.float32)
    odt = wk.dtype      # keep K/V in the matmul operand dtype (bf16-friendly)

    nb = _nbytes
    est = (2 * (nb((KV_TILE, Dk), ctx.dtype) + 2 * nb((KV_TILE, I), odt))
           + 2 * nb((Dk, I), odt) + 2 * nb((1, Dk), jnp.float32)
           + 2 * nb((KV_TILE, Dk), jnp.float32) + 2 * nb((KV_TILE, I), jnp.float32))

    kern = functools.partial(_kv_proj_kernel, norm_ctx=norm_ctx, eps=eps)
    k, v = pl.pallas_call(
        kern,
        out_shape=(jax.ShapeDtypeStruct((B, skp, I), odt),
                   jax.ShapeDtypeStruct((B, skp, I), odt)),
        grid=(B, skp // KV_TILE),
        in_specs=[
            pl.BlockSpec((1, KV_TILE, Dk), lambda b, s: (b, s, 0)),
            _const_spec((1, Dk), lambda b, s: (0, 0)),
            _const_spec((1, Dk), lambda b, s: (0, 0)),
            _const_spec((Dk, I), lambda b, s: (0, 0)),
            _const_spec((Dk, I), lambda b, s: (0, 0)),
        ],
        out_specs=(pl.BlockSpec((1, KV_TILE, I), lambda b, s: (b, s, 0)),
                   pl.BlockSpec((1, KV_TILE, I), lambda b, s: (b, s, 0))),
        compiler_params=_compiler_params(("parallel", "parallel"), est),
    )(ctx, norm_g, norm_b, wk, wv)
    return k, v


def flash_attention(h, k, v, norm_g, norm_b, wq, wo, bo, *, heads, head_dim,
                    kv_valid, tq=None, eps=1e-5):
    """out = Attention(LN(h); precomputed K, V) @ Wo + bo + h (flash over kv tiles)."""
    B, S, D = h.shape
    _, Skp, I = k.shape
    assert Skp % KV_TILE == 0 and I == heads * head_dim
    tq = _pick_tile(S, 128) if tq is None else tq
    assert S % tq == 0
    cdt = wq.dtype
    mask_kv = (kv_valid != Skp)

    nb = _nbytes
    est = (2 * (2 * nb((tq, D), h.dtype) + 2 * nb((KV_TILE, I), k.dtype))   # streamed x2
           + nb((D, I), cdt) + nb((I, D), cdt) + 3 * nb((1, D), jnp.float32)  # constants
           + nb((tq, I), cdt) + nb((tq, I), jnp.float32)                      # scratch
           + 2 * nb((heads, tq, 128), jnp.float32)
           + 3 * nb((tq, KV_TILE), jnp.float32)                               # s / p temps
           + 2 * nb((tq, D), jnp.float32) + nb((tq, I), jnp.float32))         # f32 temps

    kern = functools.partial(_flash_attn_kernel, heads=heads, head_dim=head_dim,
                             kv_valid=kv_valid, mask_kv=mask_kv, eps=eps)
    return pl.pallas_call(
        kern,
        out_shape=jax.ShapeDtypeStruct((B, S, D), h.dtype),
        grid=(B, S // tq, Skp // KV_TILE),
        in_specs=[
            pl.BlockSpec((1, tq, D), lambda b, q, kv: (b, q, 0)),       # q-tile / residual
            pl.BlockSpec((1, KV_TILE, I), lambda b, q, kv: (b, kv, 0)),  # K tile
            pl.BlockSpec((1, KV_TILE, I), lambda b, q, kv: (b, kv, 0)),  # V tile
            _const_spec((1, D), lambda b, q, kv: (0, 0)),
            _const_spec((1, D), lambda b, q, kv: (0, 0)),
            _const_spec((D, I), lambda b, q, kv: (0, 0)),
            _const_spec((I, D), lambda b, q, kv: (0, 0)),
            _const_spec((1, D), lambda b, q, kv: (0, 0)),
        ],
        out_specs=pl.BlockSpec((1, tq, D), lambda b, q, kv: (b, q, 0)),
        scratch_shapes=[pltpu.VMEM((tq, I), cdt),                 # Q (projected once)
                        pltpu.VMEM((heads, tq, 1), jnp.float32),  # running max
                        pltpu.VMEM((heads, tq, 1), jnp.float32),  # running denom
                        pltpu.VMEM((tq, I), jnp.float32)],        # PV accumulator
        compiler_params=_compiler_params(("parallel", "parallel", "arbitrary"), est),
    )(h, k, v, norm_g, norm_b, wq, wo, bo)


def fused_geglu_ff(h, norm_g, norm_b, w1v, b1v, w1g, b1g, w2, b2, *, tq=None, eps=1e-5):
    """out = Linear(GEGLU(LN(h))) + h, tiled+accumulated over the FF inner dim."""
    B, S, D = h.shape
    inner = w2.shape[0]
    tq = _pick_tile(S, 256) if tq is None else tq
    assert S % tq == 0
    ti = _pick_inner_tile(inner)
    assert inner % ti == 0
    cdt = w1v.dtype

    nb = _nbytes
    est = (2 * (2 * nb((tq, D), h.dtype)
                + 2 * nb((D, ti), cdt) + nb((ti, D), cdt)
                + 2 * nb((1, ti), b1v.dtype))
           + 3 * nb((1, D), jnp.float32)
           + nb((tq, D), cdt) + nb((tq, D), jnp.float32)
           + 3 * nb((tq, ti), jnp.float32) + 2 * nb((tq, D), jnp.float32))

    return pl.pallas_call(
        functools.partial(_geglu_ff_kernel, eps=eps),
        out_shape=jax.ShapeDtypeStruct((B, S, D), h.dtype),
        grid=(B, S // tq, inner // ti),
        in_specs=[
            pl.BlockSpec((1, tq, D), lambda b, q, j: (b, q, 0)),
            _const_spec((1, D), lambda b, q, j: (0, 0)),
            _const_spec((1, D), lambda b, q, j: (0, 0)),
            pl.BlockSpec((D, ti), lambda b, q, j: (0, j)),
            pl.BlockSpec((1, ti), lambda b, q, j: (0, j)),
            pl.BlockSpec((D, ti), lambda b, q, j: (0, j)),
            pl.BlockSpec((1, ti), lambda b, q, j: (0, j)),
            pl.BlockSpec((ti, D), lambda b, q, j: (j, 0)),
            _const_spec((1, D), lambda b, q, j: (0, 0)),
        ],
        out_specs=pl.BlockSpec((1, tq, D), lambda b, q, j: (b, q, 0)),
        scratch_shapes=[pltpu.VMEM((tq, D), cdt),           # LN(x), computed once
                        pltpu.VMEM((tq, D), jnp.float32)],  # output accumulator
        compiler_params=_compiler_params(("parallel", "parallel", "arbitrary"), est),
    )(h, norm_g, norm_b, w1v, b1v, w1g, b1g, w2, b2)


# ----------------------------- parameter prep (one-time) --------------------


def prepare_block_params(p, *, head_dim, weight_dtype=None):
    """One-time parameter preparation hoisted out of the forward path:
    fold the softmax scale into wq, split the GEGLU projection into value/gate
    halves, and optionally cast matmul weights to bf16 (MXU-native operands)."""
    def cast(w):
        return w.astype(weight_dtype) if weight_dtype is not None else w

    scale = head_dim ** -0.5
    inner = p["ff_w2"].shape[0]
    q = dict(p)
    for name in ("attn1_wq", "attn2_wq"):
        q[name] = cast((p[name].astype(jnp.float32) * scale).astype(p[name].dtype))
    for name in ("attn1_wk", "attn1_wv", "attn1_wo",
                 "attn2_wk", "attn2_wv", "attn2_wo", "ff_w2"):
        q[name] = cast(p[name])
    q["ff_w1v"], q["ff_w1g"] = cast(p["ff_w1"][:, :inner]), cast(p["ff_w1"][:, inner:])
    q["ff_b1v"], q["ff_b1g"] = p["ff_b1"][:, :inner], p["ff_b1"][:, inner:]
    del q["ff_w1"], q["ff_b1"]
    return q


# ----------------------------- module wrapper --------------------------------


def basic_transformer_block(hidden_states, encoder_hidden_states, p,
                            *, heads, head_dim, tq=None):
    """Forward pass of BasicTransformerBlock (LayerNorm variant, no temporal attn).
    `p` must be the output of prepare_block_params()."""
    h = hidden_states
    S = h.shape[1]

    # attn1 (self-attention): K/V projected once per batch element, then
    # LN1 + flash attention + out-proj + residual in one pallas_call.
    k1, v1 = project_kv(h, p["norm1_g"], p["norm1_b"],
                        p["attn1_wk"], p["attn1_wv"], norm_ctx=True)
    h = flash_attention(h, k1, v1, p["norm1_g"], p["norm1_b"],
                        p["attn1_wq"], p["attn1_wo"], p["attn1_bo"],
                        heads=heads, head_dim=head_dim, kv_valid=S, tq=tq)

    # attn2 (cross-attention): encoder K/V projected once (context padded to 128
    # and masked), then LN2 + flash attention + out-proj + residual.
    k2, v2 = project_kv(encoder_hidden_states, None, None,
                        p["attn2_wk"], p["attn2_wv"], norm_ctx=False)
    h = flash_attention(h, k2, v2, p["norm2_g"], p["norm2_b"],
                        p["attn2_wq"], p["attn2_wo"], p["attn2_bo"],
                        heads=heads, head_dim=head_dim,
                        kv_valid=encoder_hidden_states.shape[1], tq=tq)

    # feed-forward: LN3 + GEGLU (inner-dim tiled) + residual.
    h = fused_geglu_ff(h, p["norm3_g"], p["norm3_b"],
                       p["ff_w1v"], p["ff_b1v"], p["ff_w1g"], p["ff_b1g"],
                       p["ff_w2"], p["ff_b2"], tq=tq)
    return h


# ----------------------------- pure-JAX reference ----------------------------


def _ref_block(x, enc, p, heads, head_dim):
    def ln(x, g, b):
        mu = x.mean(-1, keepdims=True)
        var = ((x - mu) ** 2).mean(-1, keepdims=True)
        return (x - mu) / jnp.sqrt(var + 1e-5) * g + b

    def attn(x, ctx, wq, wk, wv, wo, bo):
        q, k, v = x @ wq, ctx @ wk, ctx @ wv
        B, S, I = q.shape
        Sk = k.shape[1]
        q = q.reshape(B, S, heads, head_dim).transpose(0, 2, 1, 3)
        k = k.reshape(B, Sk, heads, head_dim).transpose(0, 2, 1, 3)
        v = v.reshape(B, Sk, heads, head_dim).transpose(0, 2, 1, 3)
        s = jnp.einsum("bhqd,bhkd->bhqk", q, k) * head_dim ** -0.5
        pr = jax.nn.softmax(s, axis=-1)
        o = jnp.einsum("bhqk,bhkd->bhqd", pr, v)
        o = o.transpose(0, 2, 1, 3).reshape(B, S, I)
        return o @ wo + bo

    def ff(x, w1, b1, w2, b2):
        inner = w2.shape[0]
        proj = x @ w1 + b1
        hidden, gate = proj[..., :inner], proj[..., inner:]
        return (hidden * jax.nn.gelu(gate, approximate=False)) @ w2 + b2

    h = x
    h = attn(ln(h, p["norm1_g"], p["norm1_b"]), ln(h, p["norm1_g"], p["norm1_b"]),
             p["attn1_wq"], p["attn1_wk"], p["attn1_wv"],
             p["attn1_wo"], p["attn1_bo"]) + h
    h = attn(ln(h, p["norm2_g"], p["norm2_b"]), enc,
             p["attn2_wq"], p["attn2_wk"], p["attn2_wv"],
             p["attn2_wo"], p["attn2_bo"]) + h
    h = ff(ln(h, p["norm3_g"], p["norm3_b"]),
           p["ff_w1"], p["ff_b1"], p["ff_w2"], p["ff_b2"]) + h
    return h


# ----------------------------- main ------------------------------------------


if __name__ == "__main__":
    # sizes
    B = 2          # batch * video frames
    S = 16         # spatial tokens (h*w)
    D = 32         # dim
    H = 4          # num_attention_heads
    HD = 8         # attention_head_dim
    I = H * HD     # inner dim == D here
    S_ENC = 8      # encoder (text) sequence length
    D_ENC = 64     # cross_attention_dim
    FF_IN = 4 * D  # FeedForward mult=4

    key = jax.random.PRNGKey(0)
    ks = jax.random.split(key, 16)

    def w(k, shape, scale=0.02):
        return (scale * jax.random.normal(k, shape)).astype(jnp.float32)

    params = {
        # LayerNorms: PyTorch default init (gamma=1, beta=0)
        "norm1_g": jnp.ones((1, D), jnp.float32), "norm1_b": jnp.zeros((1, D), jnp.float32),
        "norm2_g": jnp.ones((1, D), jnp.float32), "norm2_b": jnp.zeros((1, D), jnp.float32),
        "norm3_g": jnp.ones((1, D), jnp.float32), "norm3_b": jnp.zeros((1, D), jnp.float32),
        # attn1: self-attention (to_q/k/v bias-less, to_out has bias)
        "attn1_wq": w(ks[0], (D, I)), "attn1_wk": w(ks[1], (D, I)),
        "attn1_wv": w(ks[2], (D, I)), "attn1_wo": w(ks[3], (I, D)),
        "attn1_bo": jnp.zeros((1, D), jnp.float32),
        # attn2: cross-attention (k/v project from encoder dim)
        "attn2_wq": w(ks[4], (D, I)), "attn2_wk": w(ks[5], (D_ENC, I)),
        "attn2_wv": w(ks[6], (D_ENC, I)), "attn2_wo": w(ks[7], (I, D)),
        "attn2_bo": jnp.zeros((1, D), jnp.float32),
        # FeedForward: GEGLU proj (D -> 2*4D) then Linear (4D -> D)
        "ff_w1": w(ks[8], (D, 2 * FF_IN)), "ff_b1": jnp.zeros((1, 2 * FF_IN), jnp.float32),
        "ff_w2": w(ks[9], (FF_IN, D)), "ff_b2": jnp.zeros((1, D), jnp.float32),
    }

    hidden_states = jax.random.normal(ks[10], (B, S, D), jnp.float32)
    encoder_hidden_states = jax.random.normal(ks[11], (B, S_ENC, D_ENC), jnp.float32)

    # ---- f32 weights: strict check against the pure-JAX reference ----
    prepared = prepare_block_params(params, head_dim=HD)
    out = basic_transformer_block(hidden_states, encoder_hidden_states, prepared,
                                  heads=H, head_dim=HD)
    out = jax.block_until_ready(out)
    ref = _ref_block(hidden_states, encoder_hidden_states, params, H, HD)
    assert out.shape == (B, S, D)
    assert np.all(np.isfinite(np.asarray(out)))
    np.testing.assert_allclose(np.asarray(out), np.asarray(ref), atol=2e-3, rtol=2e-3)

    # ---- bf16 weight storage (native MXU operands, half the weight HBM traffic);
    #      LN stats / softmax / accumulation remain f32 inside the kernels ----
    matmul_weights = ("attn1_wq", "attn1_wk", "attn1_wv", "attn1_wo",
                      "attn2_wq", "attn2_wk", "attn2_wv", "attn2_wo",
                      "ff_w1", "ff_w2")
    params_bf16_ref = {k: (v.astype(jnp.bfloat16) if k in matmul_weights else v)
                       for k, v in params.items()}
    prepared_bf16 = prepare_block_params(params, head_dim=HD, weight_dtype=jnp.bfloat16)
    out_bf16 = basic_transformer_block(hidden_states, encoder_hidden_states,
                                       prepared_bf16, heads=H, head_dim=HD)
    out_bf16 = jax.block_until_ready(out_bf16)
    ref_bf16 = _ref_block(hidden_states, encoder_hidden_states, params_bf16_ref, H, HD)
    assert np.all(np.isfinite(np.asarray(out_bf16)))
    np.testing.assert_allclose(np.asarray(out_bf16), np.asarray(ref_bf16),
                               atol=2e-2, rtol=2e-2)

    print("KERNEL_OK")
</pallas_src>

<mosaic_0001>
module attributes {stable_mosaic.version = 11 : i64} {
  func.func @_probe(%arg0: i32, %arg1: memref<8x128xf32, #tpu.memory_space<vmem>>, %arg2: memref<8x128xf32, #tpu.memory_space<vmem>>) attributes {dimension_semantics = [#tpu.dimension_semantics<arbitrary>], iteration_bounds = array<i64: 2>, scalar_prefetch = 0 : i64, scratch_operands = 0 : i64, tpu.core_type = #tpu.core_type<tc>, window_params = [{pipeline_mode = #tpu.pipeline_mode<synchronous>, transform_indices = @transform_0, window_bounds = array<i64: 8, 128>}, {pipeline_mode = #tpu.pipeline_mode<synchronous>, transform_indices = @transform_1, window_bounds = array<i64: 8, 128>}]} {
    %c0 = arith.constant 0 : index
    %c0_0 = arith.constant 0 : index
    %0 = vector.load %arg1[%c0, %c0_0] : memref<8x128xf32, #tpu.memory_space<vmem>>, vector<8x128xf32>
    %c0_1 = arith.constant 0 : index
    %c0_2 = arith.constant 0 : index
    %1 = vector.load %arg2[%c0_1, %c0_2] : memref<8x128xf32, #tpu.memory_space<vmem>>, vector<8x128xf32>
    tpu.vector_store %arg2[%c0_1, %c0_2], %0 {strides = array<i32>} : memref<8x128xf32, #tpu.memory_space<vmem>>, vector<8x128xf32>,
    return
  }
  func.func @transform_0(%arg0: i32) -> (i32, i32) {
    %c0_i32 = arith.constant 0 : i32
    %c0_i32_0 = arith.constant 0 : i32
    %c0_i32_1 = arith.constant 0 : i32
    return %c0_i32, %c0_i32_0 : i32, i32
  }
  func.func @transform_1(%arg0: i32) -> (i32, i32) {
    %c0_i32 = arith.constant 0 : i32
    %c0_i32_0 = arith.constant 0 : i32
    %c0_i32_1 = arith.constant 0 : i32
    return %c0_i32, %c0_i32_0 : i32, i32
  }
}

module attributes {stable_mosaic.version = 11 : i64} {
  func.func @_kv_proj_kernel(%arg0: i32, %arg1: i32, %arg2: memref<1x128x32xf32, #tpu.memory_space<vmem>>, %arg3: memref<1x32xf32, #tpu.memory_space<vmem>>, %arg4: memref<1x32xf32, #tpu.memory_space<vmem>>, %arg5: memref<32x32xf32, #tpu.memory_space<vmem>>, %arg6: memref<32x32xf32, #tpu.memory_space<vmem>>, %arg7: memref<1x128x32xf32, #tpu.memory_space<vmem>>, %arg8: memref<1x128x32xf32, #tpu.memory_space<vmem>>) attributes {dimension_semantics = [#tpu.dimension_semantics<parallel>, #tpu.dimension_semantics<parallel>], iteration_bounds = array<i64: 2, 1>, scalar_prefetch = 0 : i64, scratch_operands = 0 : i64, tpu.core_type = #tpu.core_type<tc>, window_params = [{transform_indices = @transform_0, window_bounds = array<i64: 1, 128, 32>}, {pipeline_mode = #tpu.pipeline_mode<synchronous>, transform_indices = @transform_1, window_bounds = array<i64: 1, 32>}, {pipeline_mode = #tpu.pipeline_mode<synchronous>, transform_indices = @transform_2, window_bounds = array<i64: 1, 32>}, {pipeline_mode = #tpu.pipeline_mode<synchronous>, transform_indices = @transform_3, window_bounds = array<i64: 32, 32>}, {pipeline_mode = #tpu.pipeline_mode<synchronous>, transform_indices = @transform_4, window_bounds = array<i64: 32, 32>}, {transform_indices = @transform_5, window_bounds = array<i64: 1, 128, 32>}, {transform_indices = @transform_6, window_bounds = array<i64: 1, 128, 32>}]} {
    %c0 = arith.constant 0 : index
    %c0_0 = arith.constant 0 : index
    %c0_1 = arith.constant 0 : index
    %0 = vector.load %arg2[%c0, %c0_0, %c0_1] : memref<1x128x32xf32, #tpu.memory_space<vmem>>, vector<1x128x32xf32>
    %1 = vector.shape_cast %0 : vector<1x128x32xf32> to vector<128x32xf32>
    %c0_2 = arith.constant 0 : index
    %c0_3 = arith.constant 0 : index
    %2 = vector.load %arg3[%c0_2, %c0_3] : memref<1x32xf32, #tpu.memory_space<vmem>>, vector<1x32xf32>
    %c0_4 = arith.constant 0 : index
    %c0_5 = arith.constant 0 : index
    %3 = vector.load %arg4[%c0_4, %c0_5] : memref<1x32xf32, #tpu.memory_space<vmem>>, vector<1x32xf32>
    %cst = arith.constant dense<0.000000e+00> : vector<128xf32>
    %4 = vector.multi_reduction <add>, %1, %cst [1] : vector<128x32xf32> to vector<128xf32>
    %5 = vector.shape_cast %4 : vector<128xf32> to vector<128x1xf32>
    %cst_6 = arith.constant 3.200000e+01 : f32
    %6 = vector.broadcast %cst_6 : f32 to vector<128x1xf32>
    %7 = arith.divf %5, %6 : vector<128x1xf32>
    %8 = vector.broadcast %7 : vector<128x1xf32> to vector<128x32xf32>
    %9 = arith.subf %1, %8 : vector<128x32xf32>
    %10 = arith.mulf %9, %9 : vector<128x32xf32>
    %cst_7 = arith.constant dense<0.000000e+00> : vector<128xf32>
    %11 = vector.multi_reduction <add>, %10, %cst_7 [1] : vector<128x32xf32> to vector<128xf32>
    %12 = vector.shape_cast %11 : vector<128xf32> to vector<128x1xf32>
    %cst_8 = arith.constant 3.200000e+01 : f32
    %13 = vector.broadcast %cst_8 : f32 to vector<128x1xf32>
    %14 = arith.divf %12, %13 : vector<128x1xf32>
    %cst_9 = arith.constant 9.99999974E-6 : f32
    %15 = vector.broadcast %cst_9 : f32 to vector<128x1xf32>
    %16 = arith.addf %14, %15 : vector<128x1xf32>
    %17 = math.rsqrt %16 : vector<128x1xf32>
    %18 = vector.broadcast %17 : vector<128x1xf32> to vector<128x32xf32>
    %19 = arith.mulf %9, %18 : vector<128x32xf32>
    %20 = vector.broadcast %2 : vector<1x32xf32> to vector<128x32xf32>
    %21 = arith.mulf %19, %20 : vector<128x32xf32>
    %22 = vector.broadcast %3 : vector<1x32xf32> to vector<128x32xf32>
    %23 = arith.addf %21, %22 : vector<128x32xf32>
    %c0_10 = arith.constant 0 : index
    %c0_11 = arith.constant 0 : index
    %24 = vector.load %arg5[%c0_10, %c0_11] : memref<32x32xf32, #tpu.memory_space<vmem>>, vector<32x32xf32>
    %cst_12 = arith.constant dense<0.000000e+00> : vector<128x32xf32>
    %25 = tpu.matmul %23, %24, %cst_12 {dimension_numbers = #tpu.dot_dimension_numbers<[1], [0], [0], [1], [0, 0, 1, 1], [], []>} : vector<128x32xf32>, vector<32x32xf32>, vector<128x32xf32> -> vector<128x32xf32>
    %c0_13 = arith.constant 0 : index
    %c0_14 = arith.constant 0 : index
    %26 = vector.load %arg6[%c0_13, %c0_14] : memref<32x32xf32, #tpu.memory_space<vmem>>, vector<32x32xf32>
    %cst_15 = arith.constant dense<0.000000e+00> : vector<128x32xf32>
    %27 = tpu.matmul %23, %26, %cst_15 {dimension_numbers = #tpu.dot_dimension_numbers<[1], [0], [0], [1], [0, 0, 1, 1], [], []>} : vector<128x32xf32>, vector<32x32xf32>, vector<128x32xf32> -> vector<128x32xf32>
    %c0_16 = arith.constant 0 : index
    %c0_17 = arith.constant 0 : index
    %c0_18 = arith.constant 0 : index
    %28 = vector.load %arg7[%c0_16, %c0_17, %c0_18] : memref<1x128x32xf32, #tpu.memory_space<vmem>>, vector<1x128x32xf32>
    %29 = vector.shape_cast %28 : vector<1x128x32xf32> to vector<128x32xf32>
    %30 = vector.shape_cast %25 : vector<128x32xf32> to vector<1x128x32xf32>
    tpu.vector_store %arg7[%c0_16, %c0_17, %c0_18], %30 {strides = array<i32>} : memref<1x128x32xf32, #tpu.memory_space<vmem>>, vector<1x128x32xf32>,
    %c0_19 = arith.constant 0 : index
    %c0_20 = arith.constant 0 : index
    %c0_21 = arith.constant 0 : index
    %31 = vector.load %arg8[%c0_19, %c0_20, %c0_21] : memref<1x128x32xf32, #tpu.memory_space<vmem>>, vector<1x128x32xf32>
    %32 = vector.shape_cast %31 : vector<1x128x32xf32> to vector<128x32xf32>
    %33 = vector.shape_cast %27 : vector<128x32xf32> to vector<1x128x32xf32>
    tpu.vector_store %arg8[%c0_19, %c0_20, %c0_21], %33 {strides = array<i32>} : memref<1x128x32xf32, #tpu.memory_space<vmem>>, vector<1x128x32xf32>,
    return
  }
  func.func @transform_0(%arg0: i32, %arg1: i32) -> (i32, i32, i32) {
    %c0_i32 = arith.constant 0 : i32
    %c0_i32_0 = arith.constant 0 : i32
    return %arg0, %arg1, %c0_i32 : i32, i32, i32
  }
  func.func @transform_1(%arg0: i32, %arg1: i32) -> (i32, i32) {
    %c0_i32 = arith.constant 0 : i32
    %c0_i32_0 = arith.constant 0 : i32
    %c0_i32_1 = arith.constant 0 : i32
    return %c0_i32, %c0_i32_0 : i32, i32
  }
  func.func @transform_2(%arg0: i32, %arg1: i32) -> (i32, i32) {
    %c0_i32 = arith.constant 0 : i32
    %c0_i32_0 = arith.constant 0 : i32
    %c0_i32_1 = arith.constant 0 : i32
    return %c0_i32, %c0_i32_0 : i32, i32
  }
  func.func @transform_3(%arg0: i32, %arg1: i32) -> (i32, i32) {
    %c0_i32 = arith.constant 0 : i32
    %c0_i32_0 = arith.constant 0 : i32
    %c0_i32_1 = arith.constant 0 : i32
    return %c0_i32, %c0_i32_0 : i32, i32
  }
  func.func @transform_4(%arg0: i32, %arg1: i32) -> (i32, i32) {
    %c0_i32 = arith.constant 0 : i32
    %c0_i32_0 = arith.constant 0 : i32
    %c0_i32_1 = arith.constant 0 : i32
    return %c0_i32, %c0_i32_0 : i32, i32
  }
  func.func @transform_5(%arg0: i32, %arg1: i32) -> (i32, i32, i32) {
    %c0_i32 = arith.constant 0 : i32
    %c0_i32_0 = arith.constant 0 : i32
    return %arg0, %arg1, %c0_i32 : i32, i32, i32
  }
  func.func @transform_6(%arg0: i32, %arg1: i32) -> (i32, i32, i32) {
    %c0_i32 = arith.constant 0 : i32
    %c0_i32_0 = arith.constant 0 : i32
    return %arg0, %arg1, %c0_i32 : i32, i32, i32
  }
}

</mosaic_0001>

<bundles_post_ra>
// kernel: tpu_custom_call.1
= control target key start
LH: loop header
LB: loop body
LE: loop exit
PB: predicated region body
PF: predicated region fallthrough
CT: control target
= control target key end

     0   :  { %6 = vsyncpa [#allocation3], 0  ;;  %s340_s0 = inlined_call_operand.hbm [shape: f32[8,128], index: 0, kind: input, shape index: {}]   ;;  %s341_s1 = inlined_call_operand.hbm [shape: f32[8,128], index: 1, kind: output, shape index: {}]  }
   0x1   :  { %7 = vsyncpa [#allocation4], 0  ;;  %s261_s6 = smov 0  }
   0x2 LB: > { %s144_s7 = sadd.s32 4294967295, %s247_s6   ;;  %p145_p0 = scmp.ge.s32.totalorder %s247_s6, 1  ;;  %s247_s6 = sphi %s261_s6, %s13_s6  }
   0x3   : > { %p60_p1 = scmp.lt.s32.totalorder %s247_s6, 3  ;;  %p275_p3 = scmp.eq.s32.totalorder %s144_s7, 0 }
   0x4   : > { %s249_s10 = smov [#allocation2]   ;;  %s179_s15 = scalar_lea.hbm %s340_s0, 128 }
   0x5   : > { %p269_p2 = pnand %p145_p0, %p60_p1  ;;  %s73_s11 = sshll.u32 %s249_s10, 4  ;;  %s74_s11 = int_to_ptr.vmem [resolvable:$true] %s73_s11 }
   0x6   : > { %s346_s9 = scalar_select %p275_p3, 1, 0 }
   0x7   : > { %s345_s8 = scalar_select %p269_p2, 1, 0 }
   0x8   : > { %p161_p4 = pneg %p269_p2  ;;  %p180_p6 = scmp.ne.s32.totalorder %s340_s0, %s179_s15 }
   0x9   : > { %p186_p10 = scmp.lt.u32.totalorder %s179_s15, %s340_s0 }
   0xa   : > { %p283_p5 = pnand %p275_p3, %p161_p4 }
   0xc   : > { %p181_p7 = pneg %p283_p5 }
   0xe   : > { %p182_p8 = pnand %p181_p7, %p180_p6 }
  0x10   : > { %p183_p9 = pneg %p182_p8 }
  0x12   : > { %p188_p11 = pnand %p186_p10, %p183_p9 }
  0x14   : > { %191 = shalt.err (!%p188_p11)
}
  0x15   : > { %s192_s20 = scalar_lea.vmem %s74_s11, 128  ;;  %p200_p1 = scmp.lt.s32.totalorder %s74_s11, %s74_s11 }
  0x16   : > { %p193_p12 = scmp.ne.s32.totalorder %s74_s11, %s192_s20  ;;  %p201_p4 = scmp.lt.s32.totalorder %s192_s20, %s192_s20 }
  0x18   : > { %p195_p13 = pnand %p193_p12, %p181_p7  ;;  %p202_p3 = por %p201_p4, %p200_p1 }
  0x1a   : > { %p196_p0 = pneg %p195_p13 }
  0x1c   : > { %p203_p2 = pnand %p202_p3, %p196_p0 }
  0x1e   : > { %206 = shalt.err (!%p203_p2)
}
  0x1f   : > { %164 = dma.hbm_to_vmem [thread:$0]  (!%p283_p5), %s340_s0, 128, %s74_s11, [#allocation3]  }
  0x20   : > { %p348_p6 = scmp.ne.s32.totalorder %s345_s8, 0 }
  0x21   : > { %p349_p8 = scmp.ne.s32.totalorder (!%p348_p6), %s346_s9, 0 }
  0x22   : > { %86 = sbr.rel (%p348_p6) target bundleno = 67 (0x43), region = 24 }
  0x29   : > { %238 = dma.done.wait (%p349_p8), [#allocation3], 128  }
  0x2a   : > { %240 = vsyncadd (%p349_p8), [#allocation3], 4294967168  ;;  %s250_s23 = smov [#allocation5]   ;;  %p311_p2 = scmp.eq.s32.totalorder %s144_s7, 1  ;;  %v96_v0 = vld [vmem:[#allocation2] sm:$0xff] }
  0x2b   : > { %s105_s24 = sshll.u32 %s250_s23, 4  ;;  %97 = vst [vmem:[#allocation5] sm:$0xff] %v96_v0  ;;  %s106_s24 = int_to_ptr.vmem [resolvable:$true] %s105_s24 }
  0x2c   : > { %s207_s26 = scalar_lea.vmem %s106_s24, 128  ;;  %p214_p9 = scmp.lt.s32.totalorder %s106_s24, %s106_s24 }
  0x2d   : > { %p208_p3 = scmp.ne.s32.totalorder %s106_s24, %s207_s26  ;;  %p215_p10 = scmp.lt.s32.totalorder %s207_s26, %s207_s26 }
  0x2f   : > { %p209_p5 = pnand %p208_p3, %p311_p2  ;;  %p216_p11 = por %p215_p10, %p214_p9 }
  0x31   : > { %p210_p7 = pneg %p209_p5 }
  0x33   : > { %p217_p12 = pnand %p216_p11, %p210_p7 }
  0x35   : > { %220 = shalt.err (!%p217_p12)
}
  0x36   : > { %s221_s29 = scalar_lea.hbm %s341_s1, 128 }
  0x37   : > { %p222_p13 = scmp.ne.s32.totalorder %s341_s1, %s221_s29  ;;  %p227_p4 = scmp.lt.u32.totalorder %s221_s29, %s341_s1 }
  0x39   : > { %p223_p0 = pnand %p222_p13, %p311_p2 }
  0x3b   : > { %p224_p1 = pneg %p223_p0 }
  0x3d   : > { %p229_p6 = pnand %p227_p4, %p224_p1 }
  0x3f   : > { %232 = shalt.err (!%p229_p6)
}
  0x40   : > { %158 = dma.vmem_to_hbm [thread:$0]  (%p311_p2), %s106_s24, 128, %s341_s1, [#allocation4]  }
  0x41   : > { %242 = dma.done.wait (%p311_p2), [#allocation4], 128  }
  0x42   : > { %244 = vsyncadd (%p311_p2), [#allocation4], 4294967168 }
  0x43 PF: > { %s13_s6 = sadd.s32 1, %s247_s6  }
  0x44   : > { %p10_p8 = scmp.ge.s32.totalorder %s13_s6, 4  }
  0x46   :  { %12 = sbr.rel (!%p10_p8) target bundleno = 2 (0x2), region = 53 }
  0x4d   :  { %118 = vsyncpa [#allocation3], 1 }
  0x4e   :  { %120 = vsyncpa [#allocation3 + $0x1], 1 }
  0x4f   :  { %121 = vsyncpa [#allocation4], 1 }
  0x50   :  { %123 = vsyncpa [#allocation4 + $0x1], 1 }

// kernel: tpu_custom_call.1
= control target key start
LH: loop header
LB: loop body
LE: loop exit
PB: predicated region body
PF: predicated region fallthrough
CT: control target
= control target key end

     0   :  { %s1387_s21 = smov 0   ;;  %s1389_s22 = smov 0   ;;  %s1764_s0 = inlined_call_operand.vmem [shape: f32[2,128,32], index: 0, kind: input, shape index: {}]   ;;  %s1765_s1 = inlined_call_operand.vmem [shape: f32[1,32], index: 1, kind: input, shape index: {}]   ;;  %s1766_s2 = inlined_call_operand.vmem [shape: f32[1,32], index: 2, kind: input, shape index: {}]   ;;  %s1767_s3 = inlined_call_operand.vmem [shape: f32[32,32], index: 3, kind: input, shape index: {}]   ;;  %s1768_s4 = inlined_call_operand.vmem [shape: f32[32,32], index: 4, kind: input, shape index: {}]   ;;  %s1769_s5 = inlined_call_operand.vmem [shape: f32[2,128,32], index: 5, kind: output, shape index: {0}]   ;;  %s1770_s6 = inlined_call_operand.vmem [shape: f32[2,128,32], index: 6, kind: output, shape index: {1}]  }
   0x1   :  { %s1391_s23 = smov 0  }
   0x2 LB: > { %s29_s24 = sadd.s32 1, %s1346_s22  ;;  %p1106_p0 = scmp.ge.s32.totalorder %s1350_s23, 1  ;;  %s1350_s23 = sphi %s1391_s23, %s17_s23   ;;  %s1346_s22 = sphi %s1389_s22, %s1772_s22   ;;  %s1342_s21 = sphi %s1387_s21, %s1771_s21  }
   0x3   : > { %p31_p1 = scmp.ge.s32.totalorder %s29_s24, 2  ;;  %p238_p2 = scmp.lt.s32.totalorder %s1350_s23, 3 }
   0x5   : > { %s1774_s24 = smov (%p31_p1, %s29_s24), 0  ;;  %p239_p3 = pnand %p1106_p0, %p238_p2 }
   0x6   : > { %p286_p4 = scmp.lt.s32.totalorder (!%p239_p3), %s1342_s21, 1  ;;  %vm333_vm0 = vcmask (!%p239_p3), 261120  }
   0x7   : > { %242 = sbr.rel (%p239_p3) target bundleno = 577 (0x241), region = 40 }
   0xe   : > { %s1776_s21 = smov (!%p286_p4, %s1342_s21), 1 }
   0xf   : > { %s1405_s25 = sshll.u32 %s1776_s21, 7 }
  0x10   : > { %s1411_s28 = scalar_lea.vmem %s1764_s0, %s1405_s25  ;;  %s1683_s7 = scalar_lea.vmem %s1769_s5, %s1405_s25 }
  0x11   : > { %v315_v0 = vld [vmem:[%s1411_s28] sm:$0xff]  ;;  %v317_v1 = vld [vmem:[%s1411_s28 + $0x10] sm:$0xff]  ;;  %v316_v2 = vld [vmem:[%s1411_s28 + $0x8] sm:$0xff]  ;;  %s1689_s10 = scalar_lea.vmem %s1770_s6, %s1405_s25 }
  0x12   : > { %v334_v3 = vsel %vm333_vm0, %v315_v0, 0.0  ;;  %v340_v4 = vsel %vm333_vm0, %v317_v1, 0.0  ;;  %v318_v5 = vld [vmem:[%s1411_s28 + $0x18] sm:$0xff]  ;;  %v337_v6 = vsel %vm333_vm0, %v316_v2, 0.0  ;;  %v319_v8 = vld [vmem:[%s1411_s28 + $0x20] sm:$0xff]  ;;  %v320_v9 = vld [vmem:[%s1411_s28 + $0x28] sm:$0xff] }
  0x13   : > { %335 = vadd.xlane.f32.xlu0 %v334_v3  ;;  %341 = vadd.xlane.f32.xlu1 %v340_v4  ;;  %v343_v7 = vsel %vm333_vm0, %v318_v5, 0.0  ;;  %v346_v10 = vsel %vm333_vm0, %v319_v8, 0.0  ;;  %v349_v11 = vsel %vm333_vm0, %v320_v9, 0.0  ;;  %v1426_v12 = vld [vmem:[%s1411_s28 + $0x30] sm:$0xff]  ;;  %v1429_v13 = vld [vmem:[%s1411_s28 + $0x38] sm:$0xff]  ;;  %v1436_v16 = vld [vmem:[%s1411_s28 + $0x40] sm:$0xff] }
  0x14   : > { %v352_v14 = vsel %vm333_vm0, %v1426_v12, 0.0  ;;  %v355_v15 = vsel %vm333_vm0, %v1429_v13, 0.0  ;;  %v1439_v17 = vld [vmem:[%s1411_s28 + $0x48] sm:$0xff]  ;;  %v358_v18 = vsel %vm333_vm0, %v1436_v16, 0.0  ;;  %v1446_v20 = vld [vmem:[%s1411_s28 + $0x50] sm:$0xff]  ;;  %v1449_v21 = vld [vmem:[%s1411_s28 + $0x58] sm:$0xff] }
  0x15   : > { %v361_v19 = vsel %vm333_vm0, %v1439_v17, 0.0  ;;  %v364_v22 = vsel %vm333_vm0, %v1446_v20, 0.0  ;;  %v367_v23 = vsel %vm333_vm0, %v1449_v21, 0.0  ;;  %v1456_v24 = vld [vmem:[%s1411_s28 + $0x60] sm:$0xff]  ;;  %v1459_v25 = vld [vmem:[%s1411_s28 + $0x68] sm:$0xff]  ;;  %v1466_v28 = vld [vmem:[%s1411_s28 + $0x70] sm:$0xff] }
  0x16   : > { %v370_v26 = vsel %vm333_vm0, %v1456_v24, 0.0  ;;  %v373_v27 = vsel %vm333_vm0, %v1459_v25, 0.0  ;;  %v1469_v29 = vld [vmem:[%s1411_s28 + $0x78] sm:$0xff]  ;;  %v376_v30 = vsel %vm333_vm0, %v1466_v28, 0.0 }
  0x17   : > { %338 = vadd.xlane.f32.xlu0 %v337_v6  ;;  %344 = vadd.xlane.f32.xlu1 %v343_v7  ;;  %v379_v31 = vsel %vm333_vm0, %v1469_v29, 0.0 }
  0x1b   : > { %347 = vadd.xlane.f32.xlu0 %v346_v10  ;;  %350 = vadd.xlane.f32.xlu1 %v349_v11 }
  0x1f   : > { %353 = vadd.xlane.f32.xlu0 %v352_v14  ;;  %356 = vadd.xlane.f32.xlu1 %v355_v15 }
  0x23   : > { %359 = vadd.xlane.f32.xlu0 %v358_v18  ;;  %362 = vadd.xlane.f32.xlu1 %v361_v19 }
  0x27   : > { %365 = vadd.xlane.f32.xlu0 %v364_v22  ;;  %368 = vadd.xlane.f32.xlu1 %v367_v23 }
  0x2b   : > { %371 = vadd.xlane.f32.xlu0 %v370_v26  ;;  %374 = vadd.xlane.f32.xlu1 %v373_v27 }
  0x2f   : > { %377 = vadd.xlane.f32.xlu0 %v376_v30  ;;  %380 = vadd.xlane.f32.xlu1 %v379_v31 }
  0xa0   : > { %v336_v32 = vpop.xlane.xlu0 %335  ;;  %v342_v33 = vpop.xlane.xlu1 %341 }
  0xa1   : > { %v383_v34 = vmul.f32 0.03125, %v336_v32  ;;  %v385_v35 = vmul.f32 0.03125, %v342_v33 }
  0xa3   : > { %v1475_v36 = vsub.f32 %v315_v0, %v383_v34  ;;  %v1477_v37 = vsub.f32 %v317_v1, %v385_v35 }
  0xa4   : > { %v339_v38 = vpop.xlane.xlu0 %338  ;;  %v345_v39 = vpop.xlane.xlu1 %344 }
  0xa5   : > { %v384_v40 = vmul.f32 0.03125, %v339_v38  ;;  %v386_v41 = vmul.f32 0.03125, %v345_v39  ;;  %v415_v42 = vmul.f32 %v1475_v36, %v1475_v36  ;;  %v417_v43 = vmul.f32 %v1477_v37, %v1477_v37 }
  0xa7   : > { %v1483_v44 = vsub.f32 %v316_v2, %v384_v40  ;;  %v1485_v45 = vsub.f32 %v318_v5, %v386_v41  ;;  %v431_v46 = vsel %vm333_vm0, %v415_v42, 0.0  ;;  %v437_v49 = vsel %vm333_vm0, %v417_v43, 0.0 }
  0xa8   : > { %432 = vadd.xlane.f32.xlu0 %v431_v46  ;;  %v348_v47 = vpop.xlane.xlu0 %347  ;;  %v351_v48 = vpop.xlane.xlu1 %350 }
  0xa9   : > { %v387_v50 = vmul.f32 0.03125, %v348_v47  ;;  %v388_v51 = vmul.f32 0.03125, %v351_v48  ;;  %v416_v52 = vmul.f32 %v1483_v44, %v1483_v44  ;;  %v418_v53 = vmul.f32 %v1485_v45, %v1485_v45 }
  0xab   : > { %v1493_v54 = vsub.f32 %v319_v8, %v387_v50  ;;  %v1495_v55 = vsub.f32 %v320_v9, %v388_v51  ;;  %v434_v56 = vsel %vm333_vm0, %v416_v52, 0.0  ;;  %v440_v59 = vsel %vm333_vm0, %v418_v53, 0.0  ;;  %v588_v53 = vld [vmem:[%s1767_s3 + $0x8] sm:$0xff] }
  0xac   : > { %438 = vadd.xlane.f32.xlu0 %v437_v49  ;;  %435 = vadd.xlane.f32.xlu1 %v434_v56  ;;  %v354_v57 = vpop.xlane.xlu0 %353  ;;  %v357_v58 = vpop.xlane.xlu1 %356  ;;  %v784_v56 = vld [vmem:[%s1768_s4] sm:$0xff] }
  0xad   : > { %v389_v60 = vmul.f32 0.03125, %v354_v57  ;;  %v390_v61 = vmul.f32 0.03125, %v357_v58  ;;  %v419_v62 = vmul.f32 %v1493_v54, %v1493_v54  ;;  %v420_v63 = vmul.f32 %v1495_v55, %v1495_v55  ;;  %v785_v58 = vld [vmem:[%s1768_s4 + $0x8] sm:$0xff] }
  0xaf   : > { %v1504_v0 = vsub.f32 %v1426_v12, %v389_v60  ;;  %v1507_v1 = vsub.f32 %v1429_v13, %v390_v61  ;;  %v443_v2 = vsel %vm333_vm0, %v419_v62, 0.0  ;;  %v446_v5 = vsel %vm333_vm0, %v420_v63, 0.0  ;;  %v589_v60 = vld [vmem:[%s1767_s3 + $0x10] sm:$0xff]  ;;  %v590_v61 = vld [vmem:[%s1767_s3 + $0x18] sm:$0xff] }
  0xb0   : > { %441 = vadd.xlane.f32.xlu1 %v440_v59  ;;  %444 = vadd.xlane.f32.xlu0 %v443_v2  ;;  %v360_v3 = vpop.xlane.xlu0 %359  ;;  %v363_v4 = vpop.xlane.xlu1 %362  ;;  %v1264_v59 = vpack.c.bf16 %v785_v58, %v784_v56  ;;  %v1260_v62 = vpack.c.bf16 %v590_v61, %v589_v60  ;;  %v786_v63 = vld [vmem:[%s1768_s4 + $0x10] sm:$0xff]  ;;  %v787_v2 = vld [vmem:[%s1768_s4 + $0x18] sm:$0xff] }
  0xb1   : > { %v391_v6 = vmul.f32 0.03125, %v360_v3  ;;  %v392_v7 = vmul.f32 0.03125, %v363_v4  ;;  %v421_v8 = vmul.f32 %v1504_v0, %v1504_v0  ;;  %v422_v9 = vmul.f32 %v1507_v1, %v1507_v1 }
  0xb2   : > { %1265 = vmatprep.subr.bf16.mxu1 %v1264_v59  ;;  %v1268_v3 = vpack.c.bf16 %v787_v2, %v786_v63 }
  0xb3   : > { %v1516_v10 = vsub.f32 %v1436_v16, %v391_v6  ;;  %v1519_v11 = vsub.f32 %v1439_v17, %v392_v7  ;;  %v449_v12 = vsel %vm333_vm0, %v421_v8, 0.0  ;;  %v452_v15 = vsel %vm333_vm0, %v422_v9, 0.0  ;;  %1267 = vmatpush3.bf16.msra.mxu1 %v1264_v59 }
  0xb4   : > { %447 = vadd.xlane.f32.xlu1 %v446_v5  ;;  %450 = vadd.xlane.f32.xlu0 %v449_v12  ;;  %v366_v13 = vpop.xlane.xlu0 %365  ;;  %v369_v14 = vpop.xlane.xlu1 %368 }
  0xb5   : > { %v393_v18 = vmul.f32 0.03125, %v366_v13  ;;  %v394_v19 = vmul.f32 0.03125, %v369_v14  ;;  %v423_v22 = vmul.f32 %v1516_v10, %v1516_v10  ;;  %v424_v16 = vmul.f32 %v1519_v11, %v1519_v11  ;;  %1269 = vmatprep.subr.bf16.mxu1 %v1268_v3 }
  0xb7   : > { %v1528_v23 = vsub.f32 %v1446_v20, %v393_v18  ;;  %v1531_v17 = vsub.f32 %v1449_v21, %v394_v19  ;;  %v455_v26 = vsel %vm333_vm0, %v423_v22, 0.0  ;;  %v458_v31 = vsel %vm333_vm0, %v424_v16, 0.0  ;;  %1271 = vmatpush3.bf16.msra.mxu1 %v1268_v3 }
  0xb8   : > { %453 = vadd.xlane.f32.xlu1 %v452_v15  ;;  %456 = vadd.xlane.f32.xlu0 %v455_v26  ;;  %v372_v27 = vpop.xlane.xlu0 %371  ;;  %v375_v30 = vpop.xlane.xlu1 %374 }
  0xb9   : > { %v395_v32 = vmul.f32 0.03125, %v372_v27  ;;  %v396_v33 = vmul.f32 0.03125, %v375_v30  ;;  %v425_v34 = vmul.f32 %v1528_v23, %v1528_v23  ;;  %v426_v20 = vmul.f32 %v1531_v17, %v1531_v17 }
  0xbb   : > { %v1540_v35 = vsub.f32 %v1456_v24, %v395_v32  ;;  %v1543_v21 = vsub.f32 %v1459_v25, %v396_v33  ;;  %v461_v38 = vsel %vm333_vm0, %v425_v34, 0.0  ;;  %v464_v41 = vsel %vm333_vm0, %v426_v20, 0.0 }
  0xbc   : > { %459 = vadd.xlane.f32.xlu1 %v458_v31  ;;  %462 = vadd.xlane.f32.xlu0 %v461_v38  ;;  %v378_v39 = vpop.xlane.xlu0 %377  ;;  %v381_v40 = vpop.xlane.xlu1 %380  ;;  %v1592_v38 = vld [vmem:[%s1765_s1] ss:$0 sm:$0xff] }
  0xbd   : > { %v397_v42 = vmul.f32 0.03125, %v378_v39  ;;  %v398_v43 = vmul.f32 0.03125, %v381_v40  ;;  %v427_v46 = vmul.f32 %v1540_v35, %v1540_v35  ;;  %v428_v24 = vmul.f32 %v1543_v21, %v1543_v21 }
  0xbf   : > { %v1552_v47 = vsub.f32 %v1466_v28, %v397_v42  ;;  %v1555_v25 = vsub.f32 %v1469_v29, %v398_v43  ;;  %v467_v48 = vsel %vm333_vm0, %v427_v46, 0.0  ;;  %v470_v49 = vsel %vm333_vm0, %v428_v24, 0.0  ;;  %v587_v29 = vld [vmem:[%s1767_s3] sm:$0xff] }
  0xc0   : > { %465 = vadd.xlane.f32.xlu1 %v464_v41  ;;  %468 = vadd.xlane.f32.xlu0 %v467_v48  ;;  %v1256_v57 = vpack.c.bf16 %v588_v53, %v587_v29  ;;  %v1598_v46 = vld [vmem:[%s1766_s2] ss:$0 sm:$0xff] }
  0xc1   : > { %v429_v50 = vmul.f32 %v1552_v47, %v1552_v47  ;;  %v430_v51 = vmul.f32 %v1555_v25, %v1555_v25 }
  0xc2   : > { %1257 = vmatprep.subr.bf16.mxu0 %v1256_v57 }
  0xc3   : > { %v473_v52 = vsel %vm333_vm0, %v429_v50, 0.0  ;;  %v476_v28 = vsel %vm333_vm0, %v430_v51, 0.0  ;;  %1259 = vmatpush3.bf16.msra.mxu0 %v1256_v57 }
  0xc4   : > { %471 = vadd.xlane.f32.xlu1 %v470_v49  ;;  %474 = vadd.xlane.f32.xlu0 %v473_v52 }
  0xc5   : > { %1261 = vmatprep.subr.bf16.mxu0 %v1260_v62 }
  0xc7   : > { %1263 = vmatpush3.bf16.msra.mxu0 %v1260_v62 }
  0xc8   : > { %477 = vadd.xlane.f32.xlu1 %v476_v28 }
 0x135   : > { %v433_v4 = vpop.xlane.xlu0 %432 }
 0x136   : > { %v479_v5 = vmul.f32 0.03125, %v433_v4 }
 0x138   : > { %v495_v6 = vadd.f32 1e-05, %v479_v5 }
 0x139   : > { %v436_v7 = vpop.xlane.xlu1 %435  ;;  %v439_v8 = vpop.xlane.xlu0 %438 }
 0x13a   : > { %1296 = vrsqrt.f32 %v495_v6  ;;  %v480_v9 = vmul.f32 0.03125, %v436_v7  ;;  %v481_v12 = vmul.f32 0.03125, %v439_v8 }
 0x13c   : > { %v496_v13 = vadd.f32 1e-05, %v480_v9  ;;  %v497_v14 = vadd.f32 1e-05, %v481_v12 }
 0x13d   : > { %v442_v15 = vpop.xlane.xlu1 %441  ;;  %v445_v18 = vpop.xlane.xlu0 %444 }
 0x13e   : > { %1298 = vrsqrt.f32 %v496_v13  ;;  %v482_v19 = vmul.f32 0.03125, %v442_v15  ;;  %v483_v22 = vmul.f32 0.03125, %v445_v18 }
 0x13f   : > { %1300 = vrsqrt.f32 %v497_v14 }
 0x140   : > { %v498_v16 = vadd.f32 1e-05, %v482_v19  ;;  %v499_v26 = vadd.f32 1e-05, %v483_v22 }
 0x141   : > { %v448_v27 = vpop.xlane.xlu1 %447  ;;  %v451_v30 = vpop.xlane.xlu0 %450 }
 0x142   : > { %1302 = vrsqrt.f32 %v498_v16  ;;  %v484_v31 = vmul.f32 0.03125, %v448_v27  ;;  %v485_v32 = vmul.f32 0.03125, %v451_v30 }
 0x143   : > { %1304 = vrsqrt.f32 %v499_v26 }
 0x144   : > { %v1297_v33 = vpop.eup %1296  ;;  %v500_v34 = vadd.f32 1e-05, %v484_v31  ;;  %v501_v20 = vadd.f32 1e-05, %v485_v32 }
 0x145   : > { %v454_v39 = vpop.xlane.xlu1 %453  ;;  %v457_v40 = vpop.xlane.xlu0 %456  ;;  %v527_v41 = vmul.f32 %v1297_v33, %v1475_v36 }
 0x146   : > { %1306 = vrsqrt.f32 %v500_v34  ;;  %v486_v42 = vmul.f32 0.03125, %v454_v39  ;;  %v487_v43 = vmul.f32 0.03125, %v457_v40 }
 0x147   : > { %1308 = vrsqrt.f32 %v501_v20  ;;  %v549_v24 = vmul.f32 %v1592_v38, %v527_v41 }
 0x148   : > { %v1299_v48 = vpop.eup %1298  ;;  %v502_v49 = vadd.f32 1e-05, %v486_v42  ;;  %v503_v50 = vadd.f32 1e-05, %v487_v43 }
 0x149   : > { %v1301_v51 = vpop.eup %1300  ;;  %v460_v52 = vpop.xlane.xlu1 %459  ;;  %v571_v29 = vadd.f32 %v1598_v46, %v549_v24  ;;  %v528_v36 = vmul.f32 %v1299_v48, %v1483_v44 }
 0x14a   : > { %v463_v28 = vpop.xlane.xlu0 %462  ;;  %1310 = vrsqrt.f32 %v502_v49  ;;  %v488_v53 = vmul.f32 0.03125, %v460_v52  ;;  %v529_v57 = vmul.f32 %v1301_v51, %v1477_v37 }
 0x14b   : > { %v489_v56 = vmul.f32 0.03125, %v463_v28  ;;  %1312 = vrsqrt.f32 %v503_v50  ;;  %1200 = vmatprep.mubr.msk.f32.mxu0 %vm333_vm0, %v571_v29  ;;  %1232 = vmatprep.mubr.msk.f32.mxu1 %vm333_vm0, %v571_v29  ;;  %v550_v58 = vmul.f32 %v1592_v38, %v528_v36 }
 0x14c   : > { %v1303_v59 = vpop.eup %1302  ;;  %v504_v60 = vadd.f32 1e-05, %v488_v53  ;;  %v551_v62 = vmul.f32 %v1592_v38, %v529_v57 }
 0x14d   : > { %v505_v61 = vadd.f32 1e-05, %v489_v56  ;;  %v1305_v63 = vpop.eup %1304  ;;  %v466_v2 = vpop.xlane.xlu1 %465  ;;  %v572_v3 = vadd.f32 %v1598_v46, %v550_v58  ;;  %v530_v4 = vmul.f32 %v1303_v59, %v1485_v45 }
 0x14e   : > { %v469_v44 = vpop.xlane.xlu0 %468  ;;  %1314 = vrsqrt.f32 %v504_v60  ;;  %v490_v37 = vmul.f32 0.03125, %v466_v2  ;;  %v573_v6 = vadd.f32 %v1598_v46, %v551_v62  ;;  %v531_v8 = vmul.f32 %v1305_v63, %v1493_v54 }
 0x14f   : > { %v491_v5 = vmul.f32 0.03125, %v469_v44  ;;  %1316 = vrsqrt.f32 %v505_v61  ;;  %1201 = vmatmul.mubr.msk.f32.vlgmr.msra.gmra.mrb[0].mxu0 %vm333_vm0, %v572_v3  ;;  %1233 = vmatmul.mubr.msk.f32.vlgmr.msra.gmra.mrb[0].mxu1 %vm333_vm0, %v572_v3  ;;  %v552_v7 = vmul.f32 %v1592_v38, %v530_v4 }
 0x150   : > { %v1307_v9 = vpop.eup %1306  ;;  %v506_v12 = vadd.f32 1e-05, %v490_v37  ;;  %1203 = vmatprep.mubr.msk.f32.mxu0 %vm333_vm0, %v573_v6  ;;  %1235 = vmatprep.mubr.msk.f32.mxu1 %vm333_vm0, %v573_v6  ;;  %v553_v19 = vmul.f32 %v1592_v38, %v531_v8 }
 0x151   : > { %v507_v13 = vadd.f32 1e-05, %v491_v5  ;;  %v1309_v45 = vpop.eup %1308  ;;  %v472_v14 = vpop.xlane.xlu1 %471  ;;  %v574_v18 = vadd.f32 %v1598_v46, %v552_v7  ;;  %v532_v22 = vmul.f32 %v1307_v9, %v1495_v55 }
 0x152   : > { %v475_v15 = vpop.xlane.xlu0 %474  ;;  %1318 = vrsqrt.f32 %v506_v12  ;;  %v492_v16 = vmul.f32 0.03125, %v472_v14  ;;  %v533_v54 = vmul.f32 %v1309_v45, %v1504_v0  ;;  %v575_v27 = vadd.f32 %v1598_v46, %v553_v19 }
 0x153   : > { %v493_v26 = vmul.f32 0.03125, %v475_v15  ;;  %1320 = vrsqrt.f32 %v507_v13  ;;  %1204 = vmatmul.mubr.msk.f32.gmra.mrb[2].mxu0 %vm333_vm0, %v574_v18  ;;  %1236 = vmatmul.mubr.msk.f32.gmra.mrb[2].mxu1 %vm333_vm0, %v574_v18  ;;  %v554_v30 = vmul.f32 %v1592_v38, %v532_v22 }
 0x154   : > { %v1311_v31 = vpop.eup %1310  ;;  %v508_v32 = vadd.f32 1e-05, %v492_v16  ;;  %v555_v34 = vmul.f32 %v1592_v38, %v533_v54  ;;  %1206 = vmatprep.mubr.msk.f32.mxu0 %vm333_vm0, %v575_v27  ;;  %1238 = vmatprep.mubr.msk.f32.mxu1 %vm333_vm0, %v575_v27 }
 0x155   : > { %v509_v33 = vadd.f32 1e-05, %v493_v26  ;;  %v1313_v55 = vpop.eup %1312  ;;  %v478_v0 = vpop.xlane.xlu1 %477  ;;  %v576_v20 = vadd.f32 %v1598_v46, %v554_v30  ;;  %v534_v39 = vmul.f32 %v1311_v31, %v1507_v1 }
 0x156   : > { %1322 = vrsqrt.f32 %v508_v32  ;;  %v494_v40 = vmul.f32 0.03125, %v478_v0  ;;  %v577_v41 = vadd.f32 %v1598_v46, %v555_v34  ;;  %v535_v42 = vmul.f32 %v1313_v55, %v1516_v10 }
 0x157   : > { %1324 = vrsqrt.f32 %v509_v33  ;;  %1207 = vmatmul.mubr.msk.f32.gmra.mrb[4].mxu0 %vm333_vm0, %v576_v20  ;;  %1239 = vmatmul.mubr.msk.f32.gmra.mrb[4].mxu1 %vm333_vm0, %v576_v20  ;;  %v556_v43 = vmul.f32 %v1592_v38, %v534_v39 }
 0x158   : > { %v1315_v24 = vpop.eup %1314  ;;  %v510_v48 = vadd.f32 1e-05, %v494_v40  ;;  %1209 = vmatprep.mubr.msk.f32.mxu0 %vm333_vm0, %v577_v41  ;;  %1241 = vmatprep.mubr.msk.f32.mxu1 %vm333_vm0, %v577_v41  ;;  %v557_v1 = vmul.f32 %v1592_v38, %v535_v42 }
 0x159   : > { %v1317_v49 = vpop.eup %1316  ;;  %v578_v50 = vadd.f32 %v1598_v46, %v556_v43  ;;  %v536_v10 = vmul.f32 %v1315_v24, %v1519_v11 }
 0x15a   : > { %1326 = vrsqrt.f32 %v510_v48  ;;  %v579_v51 = vadd.f32 %v1598_v46, %v557_v1  ;;  %v537_v52 = vmul.f32 %v1317_v49, %v1528_v23 }
 0x15b   : > { %1210 = vmatmul.mubr.msk.f32.gmra.mrb[6].mxu0 %vm333_vm0, %v578_v50  ;;  %1242 = vmatmul.mubr.msk.f32.gmra.mrb[6].mxu1 %vm333_vm0, %v578_v50  ;;  %v558_v28 = vmul.f32 %v1592_v38, %v536_v10 }
 0x15c   : > { %v1319_v29 = vpop.eup %1318  ;;  %1212 = vmatprep.mubr.msk.f32.mxu0 %vm333_vm0, %v579_v51  ;;  %1244 = vmatprep.mubr.msk.f32.mxu1 %vm333_vm0, %v579_v51  ;;  %v559_v36 = vmul.f32 %v1592_v38, %v537_v52 }
 0x15d   : > { %v1321_v53 = vpop.eup %1320  ;;  %v580_v11 = vadd.f32 %v1598_v46, %v558_v28  ;;  %v538_v56 = vmul.f32 %v1319_v29, %v1531_v17 }
 0x15e   : > { %v581_v23 = vadd.f32 %v1598_v46, %v559_v36  ;;  %v539_v57 = vmul.f32 %v1321_v53, %v1540_v35 }
 0x15f   : > { %1213 = vmatmul.mubr.msk.f32.gmra.mrb[8].mxu0 %vm333_vm0, %v580_v11  ;;  %1245 = vmatmul.mubr.msk.f32.gmra.mrb[8].mxu1 %vm333_vm0, %v580_v11  ;;  %v560_v58 = vmul.f32 %v1592_v38, %v538_v56 }
 0x160   : > { %v1323_v59 = vpop.eup %1322  ;;  %1215 = vmatprep.mubr.msk.f32.mxu0 %vm333_vm0, %v581_v23  ;;  %1247 = vmatprep.mubr.msk.f32.mxu1 %vm333_vm0, %v581_v23  ;;  %v561_v60 = vmul.f32 %v1592_v38, %v539_v57 }
 0x161   : > { %v1325_v61 = vpop.eup %1324  ;;  %v582_v17 = vadd.f32 %v1598_v46, %v560_v58  ;;  %v540_v62 = vmul.f32 %v1323_v59, %v1543_v21 }
 0x162   : > { %v583_v35 = vadd.f32 %v1598_v46, %v561_v60  ;;  %v541_v63 = vmul.f32 %v1325_v61, %v1552_v47 }
 0x163   : > { %1216 = vmatmul.mubr.msk.f32.gmra.mrb[10].mxu0 %vm333_vm0, %v582_v17  ;;  %1248 = vmatmul.mubr.msk.f32.gmra.mrb[10].mxu1 %vm333_vm0, %v582_v17  ;;  %v562_v2 = vmul.f32 %v1592_v38, %v540_v62 }
 0x164   : > { %v1327_v44 = vpop.eup %1326  ;;  %1218 = vmatprep.mubr.msk.f32.mxu0 %vm333_vm0, %v583_v35  ;;  %1250 = vmatprep.mubr.msk.f32.mxu1 %vm333_vm0, %v583_v35  ;;  %v563_v3 = vmul.f32 %v1592_v38, %v541_v63 }
 0x165   : > { %v584_v21 = vadd.f32 %v1598_v46, %v562_v2  ;;  %v542_v4 = vmul.f32 %v1327_v44, %v1555_v25 }
 0x166   : > { %v585_v47 = vadd.f32 %v1598_v46, %v563_v3 }
 0x167   : > { %1219 = vmatmul.mubr.msk.f32.gmra.mrb[12].mxu0 %vm333_vm0, %v584_v21  ;;  %1251 = vmatmul.mubr.msk.f32.gmra.mrb[12].mxu1 %vm333_vm0, %v584_v21  ;;  %v564_v37 = vmul.f32 %v1592_v38, %v542_v4 }
 0x168   : > { %1221 = vmatprep.mubr.msk.f32.mxu0 %vm333_vm0, %v585_v47  ;;  %1253 = vmatprep.mubr.msk.f32.mxu1 %vm333_vm0, %v585_v47 }
 0x169   : > { %v586_v5 = vadd.f32 %v1598_v46, %v564_v37 }
 0x16b   : > { %1222 = vmatmul.mubr.msk.f32.gmra.mrb[14].mxu0 %vm333_vm0, %v586_v5  ;;  %1254 = vmatmul.mubr.msk.f32.gmra.mrb[14].mxu1 %vm333_vm0, %v586_v5 }
 0x222   : > { %v1202_v25 = vpop.f32.mrb[0].mxu0  ;;  %v1234_v38 = vpop.f32.mrb[0].mxu1 }
 0x223   : > { %934 = vst.msk [vmem:[%s1683_s7 + $0x8] sm:$0xff] %vm333_vm0, %v1202_v25  ;;  %950 = vst.msk [vmem:[%s1689_s10 + $0x8] sm:$0xff] %vm333_vm0, %v1234_v38  ;;  %v705_v46 = vpop.f32.mrb[1].mxu0  ;;  %v854_v6 = vpop.f32.mrb[1].mxu1 }
 0x224   : > { %933 = vst.msk [vmem:[%s1683_s7] sm:$0xff] %vm333_vm0, %v705_v46  ;;  %949 = vst.msk [vmem:[%s1689_s10] sm:$0xff] %vm333_vm0, %v854_v6 }
 0x226   : > { %v1205_v7 = vpop.f32.mrb[2].mxu0  ;;  %v1237_v8 = vpop.f32.mrb[2].mxu1 }
 0x227   : > { %936 = vst.msk [vmem:[%s1683_s7 + $0x18] sm:$0xff] %vm333_vm0, %v1205_v7  ;;  %952 = vst.msk [vmem:[%s1689_s10 + $0x18] sm:$0xff] %vm333_vm0, %v1237_v8  ;;  %v715_v9 = vpop.f32.mrb[3].mxu0  ;;  %v864_v12 = vpop.f32.mrb[3].mxu1 }
 0x228   : > { %935 = vst.msk [vmem:[%s1683_s7 + $0x10] sm:$0xff] %vm333_vm0, %v715_v9  ;;  %951 = vst.msk [vmem:[%s1689_s10 + $0x10] sm:$0xff] %vm333_vm0, %v864_v12 }
 0x22a   : > { %v1208_v13 = vpop.f32.mrb[4].mxu0  ;;  %v1240_v45 = vpop.f32.mrb[4].mxu1 }
 0x22b   : > { %938 = vst.msk [vmem:[%s1683_s7 + $0x28] sm:$0xff] %vm333_vm0, %v1208_v13  ;;  %954 = vst.msk [vmem:[%s1689_s10 + $0x28] sm:$0xff] %vm333_vm0, %v1240_v45  ;;  %v725_v14 = vpop.f32.mrb[5].mxu0  ;;  %v874_v15 = vpop.f32.mrb[5].mxu1 }
 0x22c   : > { %937 = vst.msk [vmem:[%s1683_s7 + $0x20] sm:$0xff] %vm333_vm0, %v725_v14  ;;  %953 = vst.msk [vmem:[%s1689_s10 + $0x20] sm:$0xff] %vm333_vm0, %v874_v15 }
 0x22e   : > { %v1211_v18 = vpop.f32.mrb[6].mxu0  ;;  %v1243_v19 = vpop.f32.mrb[6].mxu1 }
 0x22f   : > { %940 = vst.msk [vmem:[%s1683_s7 + $0x38] sm:$0xff] %vm333_vm0, %v1211_v18  ;;  %956 = vst.msk [vmem:[%s1689_s10 + $0x38] sm:$0xff] %vm333_vm0, %v1243_v19  ;;  %v735_v22 = vpop.f32.mrb[7].mxu0  ;;  %v884_v16 = vpop.f32.mrb[7].mxu1 }
 0x230   : > { %939 = vst.msk [vmem:[%s1683_s7 + $0x30] sm:$0xff] %vm333_vm0, %v735_v22  ;;  %955 = vst.msk [vmem:[%s1689_s10 + $0x30] sm:$0xff] %vm333_vm0, %v884_v16 }
 0x232   : > { %v1214_v26 = vpop.f32.mrb[8].mxu0  ;;  %v1246_v54 = vpop.f32.mrb[8].mxu1 }
 0x233   : > { %942 = vst.msk [vmem:[%s1683_s7 + $0x48] sm:$0xff] %vm333_vm0, %v1214_v26  ;;  %958 = vst.msk [vmem:[%s1689_s10 + $0x48] sm:$0xff] %vm333_vm0, %v1246_v54  ;;  %v745_v27 = vpop.f32.mrb[9].mxu0  ;;  %v894_v30 = vpop.f32.mrb[9].mxu1 }
 0x234   : > { %941 = vst.msk [vmem:[%s1683_s7 + $0x40] sm:$0xff] %vm333_vm0, %v745_v27  ;;  %957 = vst.msk [vmem:[%s1689_s10 + $0x40] sm:$0xff] %vm333_vm0, %v894_v30 }
 0x236   : > { %v1217_v31 = vpop.f32.mrb[10].mxu0  ;;  %v1249_v32 = vpop.f32.mrb[10].mxu1 }
 0x237   : > { %944 = vst.msk [vmem:[%s1683_s7 + $0x58] sm:$0xff] %vm333_vm0, %v1217_v31  ;;  %960 = vst.msk [vmem:[%s1689_s10 + $0x58] sm:$0xff] %vm333_vm0, %v1249_v32  ;;  %v755_v33 = vpop.f32.mrb[11].mxu0  ;;  %v904_v34 = vpop.f32.mrb[11].mxu1 }
 0x238   : > { %943 = vst.msk [vmem:[%s1683_s7 + $0x50] sm:$0xff] %vm333_vm0, %v755_v33  ;;  %959 = vst.msk [vmem:[%s1689_s10 + $0x50] sm:$0xff] %vm333_vm0, %v904_v34 }
 0x23a   : > { %v1220_v55 = vpop.f32.mrb[12].mxu0  ;;  %v1252_v0 = vpop.f32.mrb[12].mxu1 }
 0x23b   : > { %946 = vst.msk [vmem:[%s1683_s7 + $0x68] sm:$0xff] %vm333_vm0, %v1220_v55  ;;  %962 = vst.msk [vmem:[%s1689_s10 + $0x68] sm:$0xff] %vm333_vm0, %v1252_v0  ;;  %v765_v20 = vpop.f32.mrb[13].mxu0  ;;  %v914_v39 = vpop.f32.mrb[13].mxu1 }
 0x23c   : > { %945 = vst.msk [vmem:[%s1683_s7 + $0x60] sm:$0xff] %vm333_vm0, %v765_v20  ;;  %961 = vst.msk [vmem:[%s1689_s10 + $0x60] sm:$0xff] %vm333_vm0, %v914_v39 }
 0x23e   : > { %v1223_v40 = vpop.f32.mrb[14].mxu0  ;;  %v1255_v41 = vpop.f32.mrb[14].mxu1 }
 0x23f   : > { %948 = vst.msk [vmem:[%s1683_s7 + $0x78] sm:$0xff] %vm333_vm0, %v1223_v40  ;;  %964 = vst.msk [vmem:[%s1689_s10 + $0x78] sm:$0xff] %vm333_vm0, %v1255_v41  ;;  %v775_v42 = vpop.f32.mrb[15].mxu0  ;;  %v924_v43 = vpop.f32.mrb[15].mxu1 }
 0x240   : > { %947 = vst.msk [vmem:[%s1683_s7 + $0x70] sm:$0xff] %vm333_vm0, %v775_v42  ;;  %963 = vst.msk [vmem:[%s1689_s10 + $0x70] sm:$0xff] %vm333_vm0, %v924_v43 }
 0x241 PF: > { %s17_s23 = sadd.s32 1, %s1350_s23   ;;  %s1771_s21 = smov %s1346_s22 }
 0x242   : > { %p14_p5 = scmp.ge.s32.totalorder %s17_s23, 4   ;;  %s1772_s22 = smov %s1774_s24 }
 0x244   :  { %16 = sbr.rel (!%p14_p5) target bundleno = 2 (0x2), region = 82 }

</bundles_post_ra>
